<compile_context>
chip_gen: v7x
topology: tpu7x:2x2x1
jax: 0.10.0
libtpu: 0.0.40
codegen_flags: <defaults>
</compile_context>

<pallas_src>
import functools

import jax
import jax.numpy as jnp
from jax import lax
from jax.experimental import pallas as pl
from jax.experimental.pallas import tpu as pltpu

_MiB = 1024 * 1024


def _simam_kernel(x_ref, o_ref, *, pack, cols, inv_cols, inv_n, e_lambda,
                  approx_recip):
    # x_ref block: (row_tile, pack * cols); each row holds `pack` (b, c) maps.
    x = x_ref[...].astype(jnp.float32)

    if pack == 1:
        # One map per row: plain lane-axis reductions (two-pass variance).
        mu = jnp.sum(x, axis=-1, keepdims=True) * inv_cols
        d = x - mu
        d2 = d * d
        s = jnp.sum(d2, axis=-1, keepdims=True)
        coef = pl.reciprocal(4.0 * (s * inv_n + e_lambda), approx=approx_recip)
        y = d2 * coef + 0.5
    else:
        pc = pack * cols
        # 0/1 segment matrices: S[j, m] = ST[m, j] = (j // cols == m).
        # Segmented lane reductions / broadcasts become small MXU matmuls (the
        # MXU is otherwise idle in this HBM-bound kernel), avoiding any in-kernel
        # lane relayout of the big block. The matrices are 0/1 so the matmuls are
        # effectively exact segmented sums / scalar broadcasts.
        seg = lax.broadcasted_iota(jnp.int32, (pc, pack), 0) // cols
        S = (seg == lax.broadcasted_iota(jnp.int32, (pc, pack), 1)).astype(jnp.float32)
        segT = lax.broadcasted_iota(jnp.int32, (pack, pc), 1) // cols
        ST = (segT == lax.broadcasted_iota(jnp.int32, (pack, pc), 0)).astype(jnp.float32)

        sums = jnp.dot(x, S, preferred_element_type=jnp.float32)               # (rt, pack)
        mu = jnp.dot(sums * inv_cols, ST, preferred_element_type=jnp.float32)  # (rt, pc)
        d = x - mu
        d2 = d * d
        s = jnp.dot(d2, S, preferred_element_type=jnp.float32)                 # (rt, pack)
        coef = pl.reciprocal(4.0 * (s * inv_n + e_lambda), approx=approx_recip)
        y = d2 * jnp.dot(coef, ST, preferred_element_type=jnp.float32) + 0.5

    o_ref[...] = (x * jax.nn.sigmoid(y)).astype(o_ref.dtype)


def _pick_vmem_limit():
    """Generation-aware scoped-VMEM limit."""
    cap = None
    try:
        cap = getattr(pltpu.get_tpu_info(), "vmem_capacity_bytes", None)
    except Exception:
        cap = None
    if cap is not None and cap >= 100 * _MiB:
        return 64 * _MiB        # v5e / v6e: 128 MiB physical VMEM
    return 48 * _MiB            # v7x (64 MiB physical) or unknown: stay conservative


def _choose_pack(rows, cols, max_pack=16):
    """Pick how many (b, c) maps to pack per row for lane-dense stores.

    `pack` must divide rows (the packed reshape must stay contiguous/free) and we
    keep >= 8 packed rows when possible so sublane tiling and the grid stay useful.
    """
    if cols % 128 == 0:
        return 1

    def util(p):
        pc = p * cols
        return pc / float(pl.cdiv(pc, 128) * 128)

    best_p, best_u = 1, util(1)
    for p in range(2, max_pack + 1):
        if rows % p != 0:
            continue
        if rows >= 8 and rows // p < 8:
            continue
        if p * cols > 16384:     # keep segment matrices / row width small
            continue
        u = util(p)
        if u > best_u + 1e-3:    # prefer the smallest p among (near-)ties
            best_p, best_u = p, u
    return best_p


def _choose_row_tile(packed_rows, packed_cols, itemsize, vmem_limit_bytes):
    """Row tile sized against the VMEM budget (f32 upcast included)."""
    if packed_rows <= 8:
        return int(packed_rows)   # single block; dim equals full array dim
    # Live VMEM per step ~= double-buffered in + out blocks (input dtype)
    # plus a few f32 working copies of the block inside the kernel body.
    per_elem = 4 * itemsize + 16
    budget = max(vmem_limit_bytes - 4 * _MiB, 2 * _MiB)
    rt = budget // (packed_cols * per_elem)
    rt = max(8, (rt // 8) * 8)
    # Keep several grid steps so both v7x TensorCores get work and the
    # double-buffer pipeline has something to overlap.
    if packed_rows >= 32:
        rt = min(rt, max(8, ((packed_rows // 4) // 8) * 8))
    else:
        rt = min(rt, 8)
    return int(min(rt, 2048))


def simam(x, e_lambda=1e-4, row_tile=None, approx_recip=True, pack=None,
          vmem_limit_bytes=None):
    """SimAM forward. x: (B, C, H, W)."""
    b, c, h, w = x.shape
    rows = b * c
    cols = h * w
    n = float(cols - 1)
    # NOTE: H*W == 1 gives n == 0 -> inf, matching the PyTorch formula's /0.
    inv_n = (1.0 / n) if n > 0 else float("inf")

    if pack is None:
        pack = _choose_pack(rows, cols)
    packed_rows = rows // pack
    packed_cols = pack * cols
    xp = x.reshape(packed_rows, packed_cols)   # free contiguous reshape

    if vmem_limit_bytes is None:
        vmem_limit_bytes = _pick_vmem_limit()
    if row_tile is None:
        row_tile = _choose_row_tile(packed_rows, packed_cols,
                                    xp.dtype.itemsize, vmem_limit_bytes)

    grid = pl.cdiv(packed_rows, row_tile)

    kernel = functools.partial(
        _simam_kernel,
        pack=int(pack),
        cols=int(cols),
        inv_cols=1.0 / float(cols),
        inv_n=inv_n,
        e_lambda=float(e_lambda),
        approx_recip=approx_recip,
    )

    out = pl.pallas_call(
        kernel,
        out_shape=jax.ShapeDtypeStruct((packed_rows, packed_cols), x.dtype),
        grid_spec=pltpu.PrefetchScalarGridSpec(
            num_scalar_prefetch=0,
            grid=(grid,),
            in_specs=[pl.BlockSpec((row_tile, packed_cols), lambda i: (i, 0))],
            out_specs=pl.BlockSpec((row_tile, packed_cols), lambda i: (i, 0)),
        ),
        compiler_params=pltpu.CompilerParams(
            dimension_semantics=("parallel",),
            vmem_limit_bytes=int(vmem_limit_bytes),
        ),
    )(xp)

    return out.reshape(b, c, h, w)


def simam_ref(x, e_lambda=1e-4):
    """Pure-JAX reference mirroring the PyTorch forward."""
    b, c, h, w = x.shape
    n = w * h - 1
    mu = jnp.mean(x, axis=(2, 3), keepdims=True)
    d2 = (x - mu) ** 2
    y = d2 / (4.0 * (jnp.sum(d2, axis=(2, 3), keepdims=True) / n + e_lambda)) + 0.5
    return x * jax.nn.sigmoid(y)


if __name__ == "__main__":
    key = jax.random.PRNGKey(0)

    # Test 1: H*W multiple of 128 (pack == 1, plain reduction path).
    B, C, H, W = 2, 4, 16, 16
    x = jax.random.normal(key, (B, C, H, W), dtype=jnp.float32)

    out_exact = jax.block_until_ready(simam(x, approx_recip=False))
    ref = simam_ref(x)
    assert out_exact.shape == (B, C, H, W)
    assert jnp.allclose(out_exact, ref, atol=1e-5, rtol=1e-5), "exact mismatch"

    out_approx = jax.block_until_ready(simam(x, approx_recip=True))
    assert jnp.allclose(out_approx, ref, atol=2e-3, rtol=2e-3), "approx mismatch"

    # Test 2: ragged row count (B*C = 15) -> grid of 2 with a partial tail block
    # (no masking: stale tail rows are row-local and never written back).
    B2, C2, H2, W2 = 3, 5, 8, 16
    x2 = jax.random.normal(jax.random.PRNGKey(0), (B2, C2, H2, W2), dtype=jnp.float32)
    out2 = jax.block_until_ready(simam(x2, approx_recip=False))
    ref2 = simam_ref(x2)
    assert out2.shape == (B2, C2, H2, W2)
    assert jnp.allclose(out2, ref2, atol=1e-5, rtol=1e-5), "ragged mismatch"
    assert bool(jnp.all(jnp.isfinite(out2))), "non-finite output (ragged)"

    # Test 3: 7x7 maps (cols = 49, not a multiple of 128) -> lane-dense packing
    # path with segment-matrix matmuls (pack = 2 here). Tolerance leaves slack
    # for MXU f32 emulation rounding; semantic errors would be O(0.1-1).
    B3, C3, H3, W3 = 2, 8, 7, 7
    x3 = jax.random.normal(jax.random.PRNGKey(0), (B3, C3, H3, W3), dtype=jnp.float32)
    out3 = jax.block_until_ready(simam(x3, approx_recip=False))
    ref3 = simam_ref(x3)
    assert out3.shape == (B3, C3, H3, W3)
    assert jnp.allclose(out3, ref3, atol=1e-4, rtol=1e-4), "packed mismatch"
    assert bool(jnp.all(jnp.isfinite(out3))), "non-finite output (packed)"

    print("KERNEL_OK")
</pallas_src>

<mosaic_0001>
module attributes {stable_mosaic.version = 11 : i64} {
  func.func @_simam_kernel(%arg0: i32, %arg1: memref<8x256xf32, #tpu.memory_space<vmem>>, %arg2: memref<8x256xf32, #tpu.memory_space<vmem>>) attributes {dimension_semantics = [#tpu.dimension_semantics<parallel>], iteration_bounds = array<i64: 1>, scalar_prefetch = 0 : i64, scratch_operands = 0 : i64, tpu.core_type = #tpu.core_type<tc>, window_params = [{transform_indices = @transform_0, window_bounds = array<i64: 8, 256>}, {transform_indices = @transform_1, window_bounds = array<i64: 8, 256>}]} {
    %c0 = arith.constant 0 : index
    %c0_0 = arith.constant 0 : index
    %0 = vector.load %arg1[%c0, %c0_0] : memref<8x256xf32, #tpu.memory_space<vmem>>, vector<8x256xf32>
    %cst = arith.constant dense<0.000000e+00> : vector<8xf32>
    %1 = vector.multi_reduction <add>, %0, %cst [1] : vector<8x256xf32> to vector<8xf32>
    %2 = vector.shape_cast %1 : vector<8xf32> to vector<8x1xf32>
    %cst_1 = arith.constant 3.906250e-03 : f32
    %3 = vector.broadcast %cst_1 : f32 to vector<8x1xf32>
    %4 = arith.mulf %2, %3 : vector<8x1xf32>
    %5 = vector.broadcast %4 : vector<8x1xf32> to vector<8x256xf32>
    %6 = arith.subf %0, %5 : vector<8x256xf32>
    %7 = arith.mulf %6, %6 : vector<8x256xf32>
    %cst_2 = arith.constant dense<0.000000e+00> : vector<8xf32>
    %8 = vector.multi_reduction <add>, %7, %cst_2 [1] : vector<8x256xf32> to vector<8xf32>
    %9 = vector.shape_cast %8 : vector<8xf32> to vector<8x1xf32>
    %cst_3 = arith.constant 0.00392156886 : f32
    %10 = vector.broadcast %cst_3 : f32 to vector<8x1xf32>
    %11 = arith.mulf %9, %10 : vector<8x1xf32>
    %cst_4 = arith.constant 9.99999974E-5 : f32
    %12 = vector.broadcast %cst_4 : f32 to vector<8x1xf32>
    %13 = arith.addf %11, %12 : vector<8x1xf32>
    %cst_5 = arith.constant 4.000000e+00 : f32
    %14 = vector.broadcast %cst_5 : f32 to vector<8x1xf32>
    %15 = arith.mulf %14, %13 : vector<8x1xf32>
    %16 = tpu.reciprocal %15 : vector<8x1xf32> -> vector<8x1xf32>
    %17 = vector.broadcast %16 : vector<8x1xf32> to vector<8x256xf32>
    %18 = arith.mulf %7, %17 : vector<8x256xf32>
    %cst_6 = arith.constant 5.000000e-01 : f32
    %19 = vector.broadcast %cst_6 : f32 to vector<8x256xf32>
    %20 = arith.addf %18, %19 : vector<8x256xf32>
    %21 = arith.negf %20 : vector<8x256xf32>
    %22 = math.exp %21 : vector<8x256xf32>
    %cst_7 = arith.constant 1.000000e+00 : f32
    %23 = vector.broadcast %cst_7 : f32 to vector<8x256xf32>
    %24 = arith.addf %23, %22 : vector<8x256xf32>
    %25 = arith.divf %23, %24 : vector<8x256xf32>
    %26 = arith.mulf %0, %25 : vector<8x256xf32>
    %c0_8 = arith.constant 0 : index
    %c0_9 = arith.constant 0 : index
    %27 = vector.load %arg2[%c0_8, %c0_9] : memref<8x256xf32, #tpu.memory_space<vmem>>, vector<8x256xf32>
    tpu.vector_store %arg2[%c0_8, %c0_9], %26 {strides = array<i32>} : memref<8x256xf32, #tpu.memory_space<vmem>>, vector<8x256xf32>,
    return
  }
  func.func @transform_0(%arg0: i32) -> (i32, i32) {
    %c0_i32 = arith.constant 0 : i32
    %c0_i32_0 = arith.constant 0 : i32
    return %arg0, %c0_i32 : i32, i32
  }
  func.func @transform_1(%arg0: i32) -> (i32, i32) {
    %c0_i32 = arith.constant 0 : i32
    %c0_i32_0 = arith.constant 0 : i32
    return %arg0, %c0_i32 : i32, i32
  }
}

</mosaic_0001>

<bundles_post_ra>
// kernel: tpu_custom_call.1
= control target key start
LH: loop header
LB: loop body
LE: loop exit
PB: predicated region body
PF: predicated region fallthrough
CT: control target
= control target key end

     0   :  { %6 = vsyncpa [#allocation3], 0  ;;  %s171_s0 = inlined_call_operand.hbm [shape: f32[8,256], index: 0, kind: input, shape index: {}]   ;;  %s172_s1 = inlined_call_operand.hbm [shape: f32[8,256], index: 1, kind: output, shape index: {}]  }
   0x1   :  { %7 = vsyncpa [#allocation4], 0  ;;  %s135_s6 = smov [#allocation2]   ;;  %s87_s10 = scalar_lea.hbm %s171_s0, 256 }
   0x2   :  { %s14_s7 = sshll.u32 %s135_s6, 4  ;;  %p88_p0 = scmp.ne.s32.totalorder %s171_s0, %s87_s10  ;;  %s15_s7 = int_to_ptr.vmem [resolvable:$true] %s14_s7 }
   0x3   :  { %p91_p1 = scmp.lt.u32.totalorder %s87_s10, %s171_s0 }
   0x5   :  { %p93_p2 = pnand %p91_p1, %p88_p0 }
   0x7   :  { %96 = shalt.err (!%p93_p2)
}
   0x8   :  { %s97_s15 = scalar_lea.vmem %s15_s7, 256  ;;  %p102_p4 = scmp.lt.s32.totalorder %s15_s7, %s15_s7 }
   0x9   :  { %p98_p3 = scmp.ne.s32.totalorder %s15_s7, %s97_s15  ;;  %p103_p5 = scmp.lt.s32.totalorder %s97_s15, %s97_s15 }
   0xb   :  { %p104_p6 = por %p103_p5, %p102_p4 }
   0xd   :  { %p105_p7 = pnand %p104_p6, %p98_p3 }
   0xf   :  { %108 = shalt.err (!%p105_p7)
}
  0x10   :  { %17 = dma.hbm_to_vmem [thread:$0]  %s171_s0, 256, %s15_s7, [#allocation3]  }
  0x11   :  { %131 = dma.done.wait [#allocation3], 256  }
  0x12   :  { %132 = vsyncadd [#allocation3], 4294967040  ;;  %v21_v0 = vld [vmem:[#allocation2] sm:$0xff]  ;;  %v22_v1 = vld [vmem:[#allocation2 + $0x8] sm:$0xff]  ;;  %s136_s0 = smov [#allocation5]  }
  0x13   :  { %v23_v2 = vadd.f32 %v22_v1, %v21_v0  ;;  %s64_s18 = sshll.u32 %s136_s0, 4  ;;  %s65_s18 = int_to_ptr.vmem [resolvable:$true] %s64_s18 }
  0x14   :  { %s109_s19 = scalar_lea.vmem %s65_s18, 256  ;;  %p114_p9 = scmp.lt.s32.totalorder %s65_s18, %s65_s18 }
  0x15   :  { %24 = vadd.xlane.f32.xlu0 %v23_v2  ;;  %p110_p8 = scmp.ne.s32.totalorder %s65_s18, %s109_s19  ;;  %p115_p10 = scmp.lt.s32.totalorder %s109_s19, %s109_s19 }
  0x17   :  { %p116_p11 = por %p115_p10, %p114_p9 }
  0x19   :  { %p117_p12 = pnand %p116_p11, %p110_p8 }
  0xa2   :  { %v25_v3 = vpop.xlane.xlu0 %24 }
  0xa3   :  { %v26_v4 = vmul.f32 0.00390625, %v25_v3 }
  0xa5   :  { %v27_v5 = vsub.f32 %v21_v0, %v26_v4  ;;  %v28_v6 = vsub.f32 %v22_v1, %v26_v4 }
  0xa7   :  { %v29_v7 = vmul.f32 %v27_v5, %v27_v5  ;;  %v30_v8 = vmul.f32 %v28_v6, %v28_v6 }
  0xa9   :  { %v31_v9 = vadd.f32 %v30_v8, %v29_v7 }
  0xab   :  { %32 = vadd.xlane.f32.xlu0 %v31_v9 }
 0x138   :  { %v33_v10 = vpop.xlane.xlu0 %32 }
 0x139   :  { %v34_v11 = vmul.f32 0.003921569, %v33_v10 }
 0x13b   :  { %v35_v12 = vadd.f32 0.0001, %v34_v11 }
 0x13d   :  { %v36_v13 = vmul.f32 4.0, %v35_v12 }
 0x13f   :  { %77 = vrcp.f32 %v36_v13 }
 0x149   :  { %v78_v14 = vpop.eup %77 }
 0x14a   :  { %v38_v15 = vmul.f32 %v78_v14, %v29_v7  ;;  %v39_v16 = vmul.f32 %v78_v14, %v30_v8 }
 0x14c   :  { %v40_v17 = vadd.f32 0.5, %v38_v15  ;;  %v41_v18 = vadd.f32 0.5, %v39_v16 }
 0x14e   :  { %v73_v19 = vmul.f32 -1.442695, %v40_v17  ;;  %v74_v20 = vmul.f32 -1.442695, %v41_v18 }
 0x150   :  { %79 = vpow2.f32 %v73_v19 }
 0x151   :  { %81 = vpow2.f32 %v74_v20 }
 0x15a   :  { %v80_v21 = vpop.eup %79 }
 0x15b   :  { %v82_v22 = vpop.eup %81  ;;  %v48_v23 = vadd.f32 1.0, %v80_v21 }
 0x15c   :  { %v49_v24 = vadd.f32 1.0, %v82_v22 }
 0x15d   :  { %83 = vrcp.f32 %v48_v23 }
 0x15e   :  { %85 = vrcp.f32 %v49_v24 }
 0x167   :  { %v84_v25 = vpop.eup %83 }
 0x168   :  { %v86_v26 = vpop.eup %85  ;;  %v54_v27 = vmul.f32 %v84_v25, %v21_v0 }
 0x169   :  { %v55_v28 = vmul.f32 %v86_v26, %v22_v1 }
 0x16a   :  { %56 = vst [vmem:[#allocation5] sm:$0xff] %v54_v27 }
 0x16b   :  { %57 = vst [vmem:[#allocation5 + $0x8] sm:$0xff] %v55_v28 }
 0x16c   :  { %120 = shalt.err (!%p117_p12)
}
 0x16d   :  { %s121_s22 = scalar_lea.hbm %s172_s1, 256 }
 0x16e   :  { %p122_p13 = scmp.ne.s32.totalorder %s172_s1, %s121_s22  ;;  %p125_p0 = scmp.lt.u32.totalorder %s121_s22, %s172_s1 }
 0x170   :  { %p127_p1 = pnand %p125_p0, %p122_p13 }
 0x172   :  { %130 = shalt.err (!%p127_p1)
}
 0x173   :  { %67 = dma.vmem_to_hbm [thread:$0]  %s65_s18, 256, %s172_s1, [#allocation4]  }
 0x174   :  { %133 = dma.done.wait [#allocation4], 256  }
 0x175   :  { %134 = vsyncadd [#allocation4], 4294967040 }
 0x176   :  { %71 = vsyncpa [#allocation3], 1 }
 0x177   :  { %72 = vsyncpa [#allocation4], 1 }

</bundles_post_ra>
